<compile_context>
chip_gen: v7x
topology: tpu7x:2x2x1
jax: 0.10.0
libtpu: 0.0.40
codegen_flags: <defaults>
</compile_context>

<pallas_src>
import jax
import jax.numpy as jnp
from jax.experimental import pallas as pl
from jax.experimental.pallas import tpu as pltpu


# --------------------------------------------------------------------------
# Kernel
# --------------------------------------------------------------------------
def _channel_attention_kernel(x_ref, w1t_ref, w2t_ref, o_ref):
    """x block (Bt, C, S): native NCHW layout — channels on sublanes,
    flattened spatial on lanes.

    w1t_ref: (C, Cr)  -- nn.Linear(C, Cr).weight, pre-transposed in the wrapper
    w2t_ref: (Cr, C)  -- nn.Linear(Cr, C).weight, pre-transposed in the wrapper
    """
    x = x_ref[...]                                   # (Bt, C, S), native dtype
    bt = x.shape[0]

    # Adaptive avg/max pool to (1,1) == reduction over the spatial (lane) axis.
    # Accumulate in f32 without materializing an f32 copy of the whole tile.
    avg = jnp.mean(x, axis=2, dtype=jnp.float32)     # (Bt, C)
    mx = jnp.max(x, axis=2).astype(jnp.float32)      # (Bt, C)
    pooled = jnp.concatenate([avg, mx], axis=0)      # (2*Bt, C)

    w1t = w1t_ref[...].astype(jnp.float32)           # (C, Cr)
    w2t = w2t_ref[...].astype(jnp.float32)           # (Cr, C)

    # Shared MLP applied once to all 2*Bt pooled rows: exactly two matmuls.
    h = jnp.maximum(
        jnp.dot(pooled, w1t, preferred_element_type=jnp.float32), 0.0)  # (2Bt, Cr)
    a = jnp.dot(h, w2t, preferred_element_type=jnp.float32)             # (2Bt, C)

    logits = a[:bt] + a[bt:]                         # fc(avg) + fc(max), (Bt, C)
    scale = 1.0 / (1.0 + jnp.exp(-logits))           # sigmoid, f32

    # Elementwise scale in the tile's native dtype (no f32 slab for bf16 x),
    # broadcast over the spatial (lane) axis.
    o_ref[...] = (x * scale.astype(x.dtype)[:, :, None]).astype(o_ref.dtype)


# --------------------------------------------------------------------------
# Wrapper
# --------------------------------------------------------------------------
def channel_attention(x_nchw, w1, w2):
    """SE channel attention.

    x_nchw: (B, C, H, W), float32 or bfloat16 (output keeps the input dtype).
    w1:     (C // r, C)  -- nn.Linear(C, C//r, bias=False).weight
    w2:     (C, C // r)  -- nn.Linear(C//r, C, bias=False).weight
    """
    B, C, H, W = x_nchw.shape
    S = H * W
    Cr = w1.shape[0]
    dtype = x_nchw.dtype
    itemsize = jnp.dtype(dtype).itemsize

    # Native layout: (B, C, S) — a free (contiguous) reshape, no transpose.
    x = x_nchw.reshape(B, C, S)

    # Weights kept in the input dtype; pre-transposed (tiny host-side op) so
    # the kernel's (2*Bt, C) pooled operand multiplies them directly.
    w1t = jnp.asarray(w1, dtype).T                   # (C, Cr)
    w2t = jnp.asarray(w2, dtype).T                   # (Cr, C)

    # ---- Generation-aware VMEM budget --------------------------------------
    try:
        vmem_cap = int(pltpu.get_tpu_info().vmem_capacity_bytes)
    except Exception:  # pragma: no cover - conservative fallback
        vmem_cap = 64 << 20
    vmem_ceiling = (vmem_cap * 3) // 4               # headroom for Mosaic scratch

    w_bytes = (w1t.size + w2t.size) * itemsize
    img_bytes = C * S * itemsize
    # Per grid step: double-buffered input block + double-buffered output block
    # (4x) + buffered weights + ~1 MiB for f32 pooled stats / MLP activations.
    # TODO(synk): weights never change across the grid; single-buffering them
    # (pipeline_mode=pl.Buffered(1)) would buy back a little v7x headroom.
    overhead = 4 * w_bytes + (1 << 20)
    budget = max(vmem_ceiling - overhead, 4 * img_bytes)

    # ---- Batch Bt images per grid step --------------------------------------
    bt = max(1, min(B, budget // (4 * img_bytes)))
    while B % bt:
        bt -= 1
    # TODO(synk): if even Bt=1 (4*C*S*itemsize) exceeds the budget (huge C*S,
    # notably on v7x's 64 MiB VMEM) or B == 1 on v7x, switch to a two-pass
    # spatially-tiled design: pooling kernel -> (B, C) stats -> tiny MLP in
    # JAX -> spatially-tiled scale kernel with a 'parallel' spatial grid axis.

    vmem_limit = int(min(max(4 * bt * img_bytes + overhead, 4 << 20), vmem_ceiling))

    cost = pl.CostEstimate(
        flops=int(8 * B * C * Cr + 3 * B * C * S),
        transcendentals=int(B * C),
        bytes_accessed=int(2 * B * C * S * itemsize + 2 * w_bytes),
    )

    out = pl.pallas_call(
        _channel_attention_kernel,
        out_shape=jax.ShapeDtypeStruct((B, C, S), dtype),
        grid_spec=pltpu.PrefetchScalarGridSpec(
            num_scalar_prefetch=0,
            grid=(B // bt,),
            in_specs=[
                pl.BlockSpec((bt, C, S), lambda i: (i, 0, 0)),
                pl.BlockSpec((C, Cr), lambda i: (0, 0)),
                pl.BlockSpec((Cr, C), lambda i: (0, 0)),
            ],
            out_specs=pl.BlockSpec((bt, C, S), lambda i: (i, 0, 0)),
        ),
        compiler_params=pltpu.CompilerParams(
            dimension_semantics=("parallel",),
            vmem_limit_bytes=vmem_limit,
        ),
        cost_estimate=cost,
    )(x, w1t, w2t)

    return out.reshape(B, C, H, W)


# --------------------------------------------------------------------------
# Pure-JAX reference (mirrors the PyTorch forward)
# --------------------------------------------------------------------------
def channel_attention_ref(x, w1, w2):
    xf = x.astype(jnp.float32)
    avg = jnp.mean(xf, axis=(2, 3))                  # (B, C)
    mx = jnp.max(xf, axis=(2, 3))                    # (B, C)

    def fc(p):
        h = jnp.maximum(p @ w1.astype(jnp.float32).T, 0.0)      # (B, Cr)
        return h @ w2.astype(jnp.float32).T                     # (B, C)

    s = jax.nn.sigmoid(fc(avg) + fc(mx))             # (B, C)
    return (s[:, :, None, None] * xf).astype(x.dtype)


# --------------------------------------------------------------------------
# Self-test
# --------------------------------------------------------------------------
if __name__ == "__main__":
    key = jax.random.PRNGKey(0)
    # Tolerance note: the MXU runs f32 matmuls at default (bf16-pass) precision
    # both inside the kernel and in the XLA reference, with different
    # accumulation orders, so logits can differ by ~2^-8 relative.
    TOL = dict(atol=2e-2, rtol=2e-2)

    # Case 1: 128-aligned spatial axis, Bt batching folds both images into one
    # grid step.  (reduction_ratio=16)
    B, C, H, W = 2, 64, 16, 16
    Cr = C // 16
    kx, k1, k2, key = jax.random.split(key, 4)
    x = jax.random.normal(kx, (B, C, H, W), dtype=jnp.float32)
    w1 = jax.random.normal(k1, (Cr, C), dtype=jnp.float32) * 0.1
    w2 = jax.random.normal(k2, (C, Cr), dtype=jnp.float32) * 0.1
    out = jax.block_until_ready(channel_attention(x, w1, w2))
    ref = channel_attention_ref(x, w1, w2)
    assert out.shape == (B, C, H, W)
    assert jnp.allclose(out, ref, **TOL), "case1 mismatch"

    # Case 2: typical SE shape (C multiple of 128, S=49 not) — now runs on the
    # native layout (no wrapper transpose), odd batch.
    B2, C2, H2, W2 = 3, 128, 7, 7
    Cr2 = C2 // 16
    kx2, k12, k22, key = jax.random.split(key, 4)
    x2 = jax.random.normal(kx2, (B2, C2, H2, W2), dtype=jnp.float32)
    w12 = jax.random.normal(k12, (Cr2, C2), dtype=jnp.float32) * 0.1
    w22 = jax.random.normal(k22, (C2, Cr2), dtype=jnp.float32) * 0.1
    out2 = jax.block_until_ready(channel_attention(x2, w12, w22))
    ref2 = channel_attention_ref(x2, w12, w22)
    assert out2.shape == (B2, C2, H2, W2)
    assert jnp.allclose(out2, ref2, **TOL), "case2 mismatch"

    # Case 3: bf16 input path (native-dtype scale multiply, bf16 weights).
    B3, C3, H3, W3 = 2, 64, 8, 8
    Cr3 = C3 // 16
    kx3, k13, k23, key = jax.random.split(key, 4)
    x3 = jax.random.normal(kx3, (B3, C3, H3, W3), dtype=jnp.float32).astype(jnp.bfloat16)
    # bf16-representable weights so kernel (bf16 weights) and ref see the same values.
    w13 = (jax.random.normal(k13, (Cr3, C3), dtype=jnp.float32) * 0.1
           ).astype(jnp.bfloat16).astype(jnp.float32)
    w23 = (jax.random.normal(k23, (C3, Cr3), dtype=jnp.float32) * 0.1
           ).astype(jnp.bfloat16).astype(jnp.float32)
    out3 = jax.block_until_ready(channel_attention(x3, w13, w23))
    ref3 = channel_attention_ref(x3, w13, w23)
    assert out3.shape == (B3, C3, H3, W3)
    assert jnp.allclose(out3.astype(jnp.float32), ref3.astype(jnp.float32),
                        atol=5e-2, rtol=5e-2), "case3 (bf16) mismatch"

    print("KERNEL_OK")
</pallas_src>

<mosaic_0001>
module attributes {stable_mosaic.version = 11 : i64} {
  func.func @_channel_attention_kernel(%arg0: i32, %arg1: memref<2x64x256xf32, #tpu.memory_space<vmem>>, %arg2: memref<64x4xf32, #tpu.memory_space<vmem>>, %arg3: memref<4x64xf32, #tpu.memory_space<vmem>>, %arg4: memref<2x64x256xf32, #tpu.memory_space<vmem>>) attributes {dimension_semantics = [#tpu.dimension_semantics<parallel>], iteration_bounds = array<i64: 1>, scalar_prefetch = 0 : i64, scratch_operands = 0 : i64, tpu.core_type = #tpu.core_type<tc>, window_params = [{transform_indices = @transform_0, window_bounds = array<i64: 2, 64, 256>}, {pipeline_mode = #tpu.pipeline_mode<synchronous>, transform_indices = @transform_1, window_bounds = array<i64: 64, 4>}, {pipeline_mode = #tpu.pipeline_mode<synchronous>, transform_indices = @transform_2, window_bounds = array<i64: 4, 64>}, {transform_indices = @transform_3, window_bounds = array<i64: 2, 64, 256>}]} {
    %c0 = arith.constant 0 : index
    %c0_0 = arith.constant 0 : index
    %c0_1 = arith.constant 0 : index
    %0 = vector.load %arg1[%c0, %c0_0, %c0_1] : memref<2x64x256xf32, #tpu.memory_space<vmem>>, vector<2x64x256xf32>
    %cst = arith.constant dense<0.000000e+00> : vector<2x64xf32>
    %1 = vector.multi_reduction <add>, %0, %cst [2] : vector<2x64x256xf32> to vector<2x64xf32>
    %cst_2 = arith.constant 2.560000e+02 : f32
    %2 = vector.broadcast %cst_2 : f32 to vector<2x64xf32>
    %3 = arith.divf %1, %2 : vector<2x64xf32>
    %cst_3 = arith.constant dense<0xFF800000> : vector<2x64xf32>
    %4 = vector.multi_reduction <maximumf>, %0, %cst_3 [2] : vector<2x64x256xf32> to vector<2x64xf32>
    %5 = tpu.concatenate %3, %4 in 0 : vector<2x64xf32>, vector<2x64xf32> -> vector<4x64xf32>
    %c0_4 = arith.constant 0 : index
    %c0_5 = arith.constant 0 : index
    %6 = vector.load %arg2[%c0_4, %c0_5] : memref<64x4xf32, #tpu.memory_space<vmem>>, vector<64x4xf32>
    %c0_6 = arith.constant 0 : index
    %c0_7 = arith.constant 0 : index
    %7 = vector.load %arg3[%c0_6, %c0_7] : memref<4x64xf32, #tpu.memory_space<vmem>>, vector<4x64xf32>
    %cst_8 = arith.constant dense<0.000000e+00> : vector<4x4xf32>
    %8 = tpu.matmul %5, %6, %cst_8 {dimension_numbers = #tpu.dot_dimension_numbers<[1], [0], [0], [1], [0, 0, 1, 1], [], []>} : vector<4x64xf32>, vector<64x4xf32>, vector<4x4xf32> -> vector<4x4xf32>
    %cst_9 = arith.constant 0.000000e+00 : f32
    %9 = vector.broadcast %cst_9 : f32 to vector<4x4xf32>
    %10 = arith.maximumf %8, %9 : vector<4x4xf32>
    %cst_10 = arith.constant dense<0.000000e+00> : vector<4x64xf32>
    %11 = tpu.matmul %10, %7, %cst_10 {dimension_numbers = #tpu.dot_dimension_numbers<[1], [0], [0], [1], [0, 0, 1, 1], [], []>} : vector<4x4xf32>, vector<4x64xf32>, vector<4x64xf32> -> vector<4x64xf32>
    %12 = vector.extract_strided_slice %11 {offsets = [0, 0], sizes = [2, 64], strides = [1, 1]} : vector<4x64xf32> to vector<2x64xf32>
    %13 = vector.extract_strided_slice %11 {offsets = [2, 0], sizes = [2, 64], strides = [1, 1]} : vector<4x64xf32> to vector<2x64xf32>
    %14 = arith.addf %12, %13 : vector<2x64xf32>
    %cst_11 = arith.constant 0.000000e+00 : f32
    %15 = vector.broadcast %cst_11 : f32 to vector<2x64xf32>
    %16 = arith.subf %15, %14 : vector<2x64xf32>
    %17 = math.exp %16 : vector<2x64xf32>
    %cst_12 = arith.constant 1.000000e+00 : f32
    %18 = vector.broadcast %cst_12 : f32 to vector<2x64xf32>
    %19 = arith.addf %18, %17 : vector<2x64xf32>
    %cst_13 = arith.constant 1.000000e+00 : f32
    %20 = vector.broadcast %cst_13 : f32 to vector<2x64xf32>
    %21 = arith.divf %20, %19 : vector<2x64xf32>
    %22 = vector.shape_cast %21 : vector<2x64xf32> to vector<2x64x1xf32>
    %23 = vector.broadcast %22 : vector<2x64x1xf32> to vector<2x64x256xf32>
    %24 = arith.mulf %0, %23 : vector<2x64x256xf32>
    %c0_14 = arith.constant 0 : index
    %c0_15 = arith.constant 0 : index
    %c0_16 = arith.constant 0 : index
    %25 = vector.load %arg4[%c0_14, %c0_15, %c0_16] : memref<2x64x256xf32, #tpu.memory_space<vmem>>, vector<2x64x256xf32>
    tpu.vector_store %arg4[%c0_14, %c0_15, %c0_16], %24 {strides = array<i32>} : memref<2x64x256xf32, #tpu.memory_space<vmem>>, vector<2x64x256xf32>,
    return
  }
  func.func @transform_0(%arg0: i32) -> (i32, i32, i32) {
    %c0_i32 = arith.constant 0 : i32
    %c0_i32_0 = arith.constant 0 : i32
    %c0_i32_1 = arith.constant 0 : i32
    return %arg0, %c0_i32, %c0_i32_0 : i32, i32, i32
  }
  func.func @transform_1(%arg0: i32) -> (i32, i32) {
    %c0_i32 = arith.constant 0 : i32
    %c0_i32_0 = arith.constant 0 : i32
    %c0_i32_1 = arith.constant 0 : i32
    return %c0_i32, %c0_i32_0 : i32, i32
  }
  func.func @transform_2(%arg0: i32) -> (i32, i32) {
    %c0_i32 = arith.constant 0 : i32
    %c0_i32_0 = arith.constant 0 : i32
    %c0_i32_1 = arith.constant 0 : i32
    return %c0_i32, %c0_i32_0 : i32, i32
  }
  func.func @transform_3(%arg0: i32) -> (i32, i32, i32) {
    %c0_i32 = arith.constant 0 : i32
    %c0_i32_0 = arith.constant 0 : i32
    %c0_i32_1 = arith.constant 0 : i32
    return %arg0, %c0_i32, %c0_i32_0 : i32, i32, i32
  }
}

</mosaic_0001>

<bundles_post_ra>
// kernel: tpu_custom_call.1
= control target key start
LH: loop header
LB: loop body
LE: loop exit
PB: predicated region body
PF: predicated region fallthrough
CT: control target
= control target key end

     0   :  { %8 = vsyncpa [#allocation3], 0  ;;  %s1182_s0 = inlined_call_operand.hbm [shape: f32[2,64,256], index: 0, kind: input, shape index: {}]   ;;  %s1183_s1 = inlined_call_operand.vmem [shape: f32[64,4], index: 1, kind: input, shape index: {}]   ;;  %s1184_s2 = inlined_call_operand.vmem [shape: f32[4,64], index: 2, kind: input, shape index: {}]   ;;  %s1185_s3 = inlined_call_operand.hbm [shape: f32[2,64,256], index: 3, kind: output, shape index: {}]  }
   0x1   :  { %9 = vsyncpa [#allocation4], 0  ;;  %s818_s12 = smov [#allocation2]   ;;  %s770_s16 = scalar_lea.hbm %s1182_s0, 4096 }
   0x2   :  { %s15_s13 = sshll.u32 %s818_s12, 4  ;;  %p771_p0 = scmp.ne.s32.totalorder %s1182_s0, %s770_s16  ;;  %s16_s13 = int_to_ptr.vmem [resolvable:$true] %s15_s13 }
   0x3   :  { %p774_p1 = scmp.lt.u32.totalorder %s770_s16, %s1182_s0 }
   0x5   :  { %p776_p2 = pnand %p774_p1, %p771_p0 }
   0x7   :  { %779 = shalt.err (!%p776_p2)
}
   0x8   :  { %s780_s21 = scalar_lea.vmem %s16_s13, 4096  ;;  %p785_p4 = scmp.lt.s32.totalorder %s16_s13, %s16_s13 }
   0x9   :  { %p781_p3 = scmp.ne.s32.totalorder %s16_s13, %s780_s21  ;;  %p786_p5 = scmp.lt.s32.totalorder %s780_s21, %s780_s21 }
   0xb   :  { %p787_p6 = por %p786_p5, %p785_p4 }
   0xd   :  { %p788_p7 = pnand %p787_p6, %p781_p3 }
   0xf   :  { %791 = shalt.err (!%p788_p7)
}
  0x10   :  { %s819_s22 = smov 256   ;;  %s820_s23 = smov 16  }
  0x11   :  { %21 = dma.hbm_to_vmem [thread:$0]  %s1182_s0, 4096, %s16_s13, [#allocation3], %s819_s22, %s819_s22, %s820_s23  }
  0x12   :  { %814 = dma.done.wait [#allocation3], 4096  }
  0x13   :  { %815 = vsyncadd [#allocation3], 4294963200  ;;  %v860_v0 = vld [vmem:[#allocation2 + $0x80] sm:$0xff]  ;;  %v862_v1 = vld [vmem:[#allocation2 + $0x88] sm:$0xff]  ;;  %vm822_vm0 = vmmov 0   ;;  %vm201_vm1 = vcmask 130112  }
  0x14   :  { %v864_v2 = vld [vmem:[#allocation2] sm:$0xff]  ;;  %v85_v3 = vadd.f32 %v862_v1, %v860_v0  ;;  %v868_v4 = vld [vmem:[#allocation2 + $0x8] sm:$0xff]  ;;  %v870_v5 = vld [vmem:[#allocation2 + $0x90] sm:$0xff]  ;;  %v150_v27 = vmax.f32 %v860_v0, %v862_v1  ;;  %vm208_vm2 = vcmask 195712   ;;  %vm215_vm3 = vcmask 261312  }
  0x15   :  { %1199 = vst [vmem:[#allocation8_spill] sm:$0xff] %v870_v5  ;;  %v872_v6 = vld [vmem:[#allocation2 + $0x98] sm:$0xff]  ;;  %v61_v7 = vadd.f32 %v868_v4, %v864_v2  ;;  %v876_v8 = vld [vmem:[#allocation2 + $0x10] sm:$0xff]  ;;  %v884_v12 = vld [vmem:[#allocation2 + $0xa0] sm:$0xff]  ;;  %v126_v25 = vmax.f32 %v864_v2, %v868_v4  ;;  %vm222_vm4 = vcmask 326912   ;;  %vm229_vm5 = vcmask 392512  }
  0x16   :  { %1200 = vst [vmem:[#allocation9_spill] sm:$0xff] %v872_v6  ;;  %v878_v9 = vld [vmem:[#allocation2 + $0x18] sm:$0xff]  ;;  %86 = vadd.xlane.f32.xlu1 %v85_v3  ;;  %v88_v10 = vadd.f32 %v872_v6, %v870_v5  ;;  %v886_v13 = vld [vmem:[#allocation2 + $0xa8] sm:$0xff]  ;;  %v888_v14 = vld [vmem:[#allocation2 + $0x20] sm:$0xff]  ;;  %v153_v26 = vmax.f32 %v870_v5, %v872_v6  ;;  %vm236_vm6 = vcmask 458112   ;;  %vm243_vm7 = vcmask 523712  }
  0x17   :  { %62 = vadd.xlane.f32.xlu0 %v61_v7  ;;  %v64_v11 = vadd.f32 %v878_v9, %v876_v8  ;;  %1201 = vst [vmem:[#allocation10_spill] sm:$0xff] %v886_v13  ;;  %v890_v15 = vld [vmem:[#allocation2 + $0x28] sm:$0xff]  ;;  %v91_v16 = vadd.f32 %v886_v13, %v884_v12  ;;  %v896_v18 = vld [vmem:[#allocation2 + $0xb0] sm:$0xff]  ;;  %v898_v19 = vld [vmem:[#allocation2 + $0xb8] sm:$0xff]  ;;  %v129_v24 = vmax.f32 %v876_v8, %v878_v9  ;;  %vm284_vm8 = vcmask 1041409  }
  0x18   :  { %v67_v17 = vadd.f32 %v890_v15, %v888_v14  ;;  %1202 = vst [vmem:[#allocation11_spill] sm:$0xff] %v896_v18  ;;  %1203 = vst [vmem:[#allocation12_spill] sm:$0xff] %v898_v19  ;;  %v900_v20 = vld [vmem:[#allocation2 + $0x30] sm:$0xff]  ;;  %v902_v21 = vld [vmem:[#allocation2 + $0x38] sm:$0xff]  ;;  %v94_v22 = vadd.f32 %v898_v19, %v896_v18  ;;  %v156_v34 = vmax.f32 %v884_v12, %v886_v13  ;;  %vm381_vm9 = vcmask 1043459  }
  0x19   :  { %v70_v23 = vadd.f32 %v902_v21, %v900_v20  ;;  %v916_v28 = vld [vmem:[#allocation2 + $0xc0] sm:$0xff]  ;;  %v918_v29 = vld [vmem:[#allocation2 + $0xc8] sm:$0xff]  ;;  %v132_v35 = vmax.f32 %v888_v14, %v890_v15  ;;  %v932_v36 = vld [vmem:[#allocation2 + $0xd0] sm:$0xff]  ;;  %v159_v42 = vmax.f32 %v896_v18, %v898_v19  ;;  %v135_v43 = vmax.f32 %v900_v20, %v902_v21 }
  0x1a   :  { %89 = vadd.xlane.f32.xlu1 %v88_v10  ;;  %1204 = vst [vmem:[#allocation13_spill] sm:$0xff] %v916_v28  ;;  %1205 = vst [vmem:[#allocation14_spill] sm:$0xff] %v918_v29  ;;  %v920_v30 = vld [vmem:[#allocation2 + $0x40] sm:$0xff]  ;;  %v922_v31 = vld [vmem:[#allocation2 + $0x48] sm:$0xff]  ;;  %v97_v32 = vadd.f32 %v918_v29, %v916_v28  ;;  %v162_v50 = vmax.f32 %v916_v28, %v918_v29  ;;  %vm384_vm10 = vcmask 1041408   ;;  %vm395_vm11 = vcmask 523264  }
  0x1b   :  { %65 = vadd.xlane.f32.xlu0 %v64_v11  ;;  %v73_v33 = vadd.f32 %v922_v31, %v920_v30  ;;  %1206 = vst [vmem:[#allocation15_spill] sm:$0xff] %v932_v36  ;;  %v934_v37 = vld [vmem:[#allocation2 + $0xd8] sm:$0xff]  ;;  %v936_v38 = vld [vmem:[#allocation2 + $0x50] sm:$0xff]  ;;  %v948_v44 = vld [vmem:[#allocation2 + $0xe0] sm:$0xff]  ;;  %v138_v51 = vmax.f32 %v920_v30, %v922_v31  ;;  %v821_v11 = vmov 0.0|0.0   ;;  %vm474_vm12 = vcmask 1043456  }
  0x1c   :  { %1207 = vst [vmem:[#allocation16_spill] sm:$0xff] %v934_v37  ;;  %v938_v39 = vld [vmem:[#allocation2 + $0x58] sm:$0xff]  ;;  %v100_v40 = vadd.f32 %v934_v37, %v932_v36  ;;  %1208 = vst [vmem:[#allocation17_spill] sm:$0xff] %v948_v44  ;;  %v950_v45 = vld [vmem:[#allocation2 + $0xe8] sm:$0xff]  ;;  %v165_v58 = vmax.f32 %v932_v36, %v934_v37  ;;  %747 = vmatprep.subr.bf16.mxu0 %v821_v11  ;;  %vm470_vm13 = vcmask 31744  }
  0x1d   :  { %v76_v41 = vadd.f32 %v938_v39, %v936_v38  ;;  %1209 = vst [vmem:[#allocation18_spill] sm:$0xff] %v950_v45  ;;  %v952_v46 = vld [vmem:[#allocation2 + $0x60] sm:$0xff]  ;;  %v954_v47 = vld [vmem:[#allocation2 + $0x68] sm:$0xff]  ;;  %v103_v48 = vadd.f32 %v950_v45, %v948_v44  ;;  %v964_v52 = vld [vmem:[#allocation2 + $0xf0] sm:$0xff]  ;;  %v141_v59 = vmax.f32 %v936_v38, %v938_v39  ;;  %v168_v60 = vmax.f32 %v948_v44, %v950_v45 }
  0x1e   :  { %92 = vadd.xlane.f32.xlu1 %v91_v16  ;;  %v79_v49 = vadd.f32 %v954_v47, %v952_v46  ;;  %1210 = vst [vmem:[#allocation19_spill] sm:$0xff] %v964_v52  ;;  %v966_v53 = vld [vmem:[#allocation2 + $0xf8] sm:$0xff]  ;;  %v968_v54 = vld [vmem:[#allocation2 + $0x70] sm:$0xff]  ;;  %v144_v61 = vmax.f32 %v952_v46, %v954_v47  ;;  %v386_v3 = vld [vmem:[%s1183_s1] sm:$0xff] }
  0x1f   :  { %68 = vadd.xlane.f32.xlu0 %v67_v17  ;;  %1211 = vst [vmem:[#allocation20_spill] sm:$0xff] %v966_v53  ;;  %v970_v55 = vld [vmem:[#allocation2 + $0x78] sm:$0xff]  ;;  %v106_v56 = vadd.f32 %v966_v53, %v964_v52  ;;  %v171_v62 = vmax.f32 %v964_v52, %v966_v53  ;;  %v387_v7 = vld [vmem:[%s1183_s1 + $0x8] sm:$0xff]  ;;  %v388_v16 = vld [vmem:[%s1183_s1 + $0x10] sm:$0xff] }
  0x20   :  { %v82_v57 = vadd.f32 %v970_v55, %v968_v54  ;;  %v147_v63 = vmax.f32 %v968_v54, %v970_v55  ;;  %v748_v10 = vpack.c.bf16 %v387_v7, %v386_v3  ;;  %v389_v17 = vld [vmem:[%s1183_s1 + $0x18] sm:$0xff] }
  0x22   :  { %95 = vadd.xlane.f32.xlu1 %v94_v22  ;;  %749 = vmatpush3.bf16.msra.mxu0 %v748_v10  ;;  %v751_v22 = vpack.c.bf16 %v389_v17, %v388_v16 }
  0x23   :  { %71 = vadd.xlane.f32.xlu0 %v70_v23  ;;  %750 = vmatprep.subr.bf16.mxu0 %v821_v11  ;;  %v390_v23 = vld [vmem:[%s1183_s1 + $0x20] sm:$0xff] }
  0x26   :  { %130 = vmax.xlane.f32.xlu1 %v129_v24  ;;  %752 = vmatpush3.bf16.msra.mxu0 %v751_v22  ;;  %v391_v24 = vld [vmem:[%s1183_s1 + $0x28] sm:$0xff] }
  0x27   :  { %127 = vmax.xlane.f32.xlu0 %v126_v25  ;;  %753 = vmatprep.subr.bf16.mxu0 %v821_v11  ;;  %v754_v25 = vpack.c.bf16 %v391_v24, %v390_v23 }
  0x2a   :  { %154 = vmax.xlane.f32.xlu1 %v153_v26  ;;  %755 = vmatpush3.bf16.msra.mxu0 %v754_v25  ;;  %v392_v26 = vld [vmem:[%s1183_s1 + $0x30] sm:$0xff] }
  0x2b   :  { %151 = vmax.xlane.f32.xlu0 %v150_v27  ;;  %756 = vmatprep.subr.bf16.mxu0 %v821_v11  ;;  %v393_v27 = vld [vmem:[%s1183_s1 + $0x38] sm:$0xff] }
  0x2e   :  { %98 = vadd.xlane.f32.xlu1 %v97_v32  ;;  %v757_v32 = vpack.c.bf16 %v393_v27, %v392_v26 }
  0x2f   :  { %74 = vadd.xlane.f32.xlu0 %v73_v33  ;;  %v823_v33 = vmov 0.0  }
  0x30   :  { %758 = vmatpush3.bf16.msra.mxu0 %v757_v32  ;;  %739 = vmatprep.mubr.msk.f32.mxu0 %vm822_vm0, %v823_v33 }
  0x31   :  { %742 = vmatprep.subr.mxu1 %v823_v33  ;;  %744 = vmatprep.mubr.msk.f32.mxu1 %vm822_vm0, %v823_v33 }
  0x32   :  { %157 = vmax.xlane.f32.xlu1 %v156_v34 }
  0x33   :  { %133 = vmax.xlane.f32.xlu0 %v132_v35 }
  0x36   :  { %101 = vadd.xlane.f32.xlu1 %v100_v40 }
  0x37   :  { %77 = vadd.xlane.f32.xlu0 %v76_v41 }
  0x3a   :  { %160 = vmax.xlane.f32.xlu1 %v159_v42 }
  0x3b   :  { %136 = vmax.xlane.f32.xlu0 %v135_v43 }
  0x3e   :  { %104 = vadd.xlane.f32.xlu1 %v103_v48 }
  0x3f   :  { %80 = vadd.xlane.f32.xlu0 %v79_v49 }
  0x42   :  { %163 = vmax.xlane.f32.xlu1 %v162_v50 }
  0x43   :  { %139 = vmax.xlane.f32.xlu0 %v138_v51 }
  0x46   :  { %107 = vadd.xlane.f32.xlu1 %v106_v56 }
  0x47   :  { %83 = vadd.xlane.f32.xlu0 %v82_v57 }
  0x4a   :  { %166 = vmax.xlane.f32.xlu1 %v165_v58 }
  0x4b   :  { %142 = vmax.xlane.f32.xlu0 %v141_v59 }
  0x4e   :  { %169 = vmax.xlane.f32.xlu1 %v168_v60 }
  0x4f   :  { %145 = vmax.xlane.f32.xlu0 %v144_v61 }
  0x52   :  { %172 = vmax.xlane.f32.xlu1 %v171_v62  ;;  %v190_v62 = vlaneseq }
  0x53   :  { %148 = vmax.xlane.f32.xlu0 %v147_v63 }
  0x54   :  { %v191_v7 = vand.u32 127, %v190_v62  ;;  %v1024_v10 = vshrl.u32 %v190_v62, 7 }
  0x56   :  { %v196_v16 = vadd.s32 4294967288, %v191_v7  ;;  %v203_v17 = vadd.s32 4294967280, %v191_v7  ;;  %v210_v23 = vadd.s32 4294967272, %v191_v7  ;;  %v1031_v24 = vsub.s32 %v191_v7, %v1024_v10 }
  0x57   :  { %v217_v53 = vadd.s32 4294967264, %v191_v7  ;;  %v224_v52 = vadd.s32 4294967256, %v191_v7  ;;  %v231_v44 = vadd.s32 4294967248, %v191_v7 }
  0x58   :  { %v1034_v26 = vsub.s32 %v196_v16, %v1024_v10  ;;  %v1037_v32 = vsub.s32 %v203_v17, %v1024_v10  ;;  %v1040_v45 = vsub.s32 %v210_v23, %v1024_v10 }
  0xa3   :  { %v87_v34 = vpop.xlane.xlu1 %86 }
  0xa4   :  { %v63_v35 = vpop.xlane.xlu0 %62  ;;  %v118_v37 = vmul.f32 0.00390625, %v87_v34 }
  0xa5   :  { %v110_v19 = vmul.f32 0.00390625, %v63_v35  ;;  %v1052_v35 = vsub.s32 %v224_v52, %v1024_v10 }
  0xa7   :  { %v90_v40 = vpop.xlane.xlu1 %89 }
  0xa8   :  { %v66_v41 = vpop.xlane.xlu0 %65  ;;  %v119_v27 = vmul.f32 0.00390625, %v90_v40  ;;  %v238_v40 = vadd.s32 4294967240, %v191_v7 }
  0xa9   :  { %v111_v62 = vmul.f32 0.00390625, %v66_v41 }
  0xaa   :  { %v252_v17 = vrot.slane %v119_v27, %v1034_v26  ;;  %v1057_v27 = vsub.s32 %v231_v44, %v1024_v10 }
  0xab   :  { %v93_v42 = vpop.xlane.xlu1 %92  ;;  %v200_v34 = vrot.slane %v111_v62, %v1034_v26 }
  0xac   :  { %v69_v43 = vpop.xlane.xlu0 %68  ;;  %v120_v36 = vmul.f32 0.00390625, %v93_v42  ;;  %v1049_v42 = vsub.s32 %v217_v53, %v1024_v10  ;;  %v1063_v53 = vsub.s32 %v238_v40, %v1024_v10 }
  0xad   :  { %v112_v18 = vmul.f32 0.00390625, %v69_v43  ;;  %v248_v43 = vrot.slane %v118_v37, %v1031_v24 }
  0xaf   :  { %v96_v48 = vpop.xlane.xlu1 %95  ;;  %v207_v6 = vrot.slane %v112_v18, %v1037_v32 }
  0xb0   :  { %v72_v49 = vpop.xlane.xlu0 %71  ;;  %v121_v16 = vmul.f32 0.00390625, %v96_v48  ;;  %v257_v48 = vrot.slane %v120_v36, %v1037_v32 }
  0xb1   :  { %v113_v28 = vmul.f32 0.00390625, %v72_v49  ;;  %v195_v49 = vrot.slane %v110_v19, %v1031_v24 }
  0xb2   :  { %v262_v62 = vrot.slane %v121_v16, %v1040_v45 }
  0xb3   :  { %v1012_v50 = vpop.xlane.xlu1 %130  ;;  %v214_v37 = vrot.slane %v113_v28, %v1040_v45  ;;  %v202_v18 = vsel %vm201_vm1, %v200_v34, %v195_v49 }
  0xb4   :  { %v1014_v51 = vpop.xlane.xlu0 %127  ;;  %v310_v36 = vrot.slane %v1012_v50, %v1034_v26 }
  0xb5   :  { %v306_v44 = vrot.slane %v1014_v51, %v1031_v24  ;;  %v209_v51 = vsel %vm208_vm2, %v207_v6, %v202_v18 }
  0xb7   :  { %v1016_v56 = vpop.xlane.xlu1 %154 }
  0xb8   :  { %v1018_v57 = vpop.xlane.xlu0 %151 }
  0xb9   :  { %v345_v16 = vrot.slane %v1018_v57, %v1031_v24  ;;  %v311_v57 = vsel %vm201_vm1, %v310_v36, %v306_v44 }
  0xbb   :  { %v99_v58 = vpop.xlane.xlu1 %98 }
  0xbc   :  { %v75_v59 = vpop.xlane.xlu0 %74  ;;  %v122_v23 = vmul.f32 0.00390625, %v99_v58  ;;  %v253_v58 = vsel %vm201_vm1, %v252_v17, %v248_v43 }
  0xbd   :  { %v114_v7 = vmul.f32 0.00390625, %v75_v59  ;;  %v349_v59 = vrot.slane %v1016_v56, %v1034_v26  ;;  %v258_v28 = vsel %vm208_vm2, %v257_v48, %v253_v58  ;;  %v216_v56 = vsel %vm215_vm3, %v214_v37, %v209_v51 }
  0xbe   :  { %v267_v40 = vrot.slane %v122_v23, %v1049_v42  ;;  %v263_v5 = vsel %vm215_vm3, %v262_v62, %v258_v28 }
  0xbf   :  { %v1020_v60 = vpop.xlane.xlu1 %157  ;;  %v221_v50 = vrot.slane %v114_v7, %v1049_v42  ;;  %v350_v48 = vsel %vm201_vm1, %v349_v59, %v345_v16 }
  0xc0   :  { %v1022_v61 = vpop.xlane.xlu0 %133  ;;  %v354_v24 = vrot.slane %v1020_v60, %v1037_v32 }
  0xc1   :  { %v315_v6 = vrot.slane %v1022_v61, %v1037_v32 }
  0xc2   :  { %v355_v58 = vsel %vm208_vm2, %v354_v24, %v350_v48 }
  0xc3   :  { %v102_v63 = vpop.xlane.xlu1 %101 }
  0xc4   :  { %v78_v3 = vpop.xlane.xlu0 %77  ;;  %v123_v17 = vmul.f32 0.00390625, %v102_v63  ;;  %v268_v63 = vsel %vm222_vm4, %v267_v40, %v263_v5 }
  0xc5   :  { %v115_v43 = vmul.f32 0.00390625, %v78_v3 }
  0xc7   :  { %v1026_v11 = vpop.xlane.xlu1 %160  ;;  %v228_v7 = vrot.slane %v115_v43, %v1052_v35 }
  0xc8   :  { %v1028_v22 = vpop.xlane.xlu0 %136  ;;  %v359_v60 = vrot.slane %v1026_v11, %v1040_v45 }
  0xc9   :  { %v320_v62 = vrot.slane %v1028_v22, %v1040_v45  ;;  %v316_v45 = vsel %vm208_vm2, %v315_v6, %v311_v57 }
  0xca   :  { %v360_v16 = vsel %vm215_vm3, %v359_v60, %v355_v58 }
  0xcb   :  { %v105_v25 = vpop.xlane.xlu1 %104 }
  0xcc   :  { %v81_v33 = vpop.xlane.xlu0 %80  ;;  %v124_v34 = vmul.f32 0.00390625, %v105_v25  ;;  %v223_v25 = vsel %vm222_vm4, %v221_v50, %v216_v56 }
  0xcd   :  { %v116_v49 = vmul.f32 0.00390625, %v81_v33  ;;  %v272_v33 = vrot.slane %v123_v17, %v1052_v35  ;;  %v230_v59 = vsel %vm229_vm5, %v228_v7, %v223_v25 }
  0xce   :  { %v277_v5 = vrot.slane %v124_v34, %v1057_v27 }
  0xcf   :  { %v1042_v29 = vpop.xlane.xlu1 %163 }
  0xd0   :  { %v1045_v41 = vpop.xlane.xlu0 %139  ;;  %v364_v61 = vrot.slane %v1042_v29, %v1049_v42  ;;  %v273_v29 = vsel %vm229_vm5, %v272_v33, %v268_v63 }
  0xd1   :  { %v325_v37 = vrot.slane %v1045_v41, %v1049_v42  ;;  %v321_v42 = vsel %vm215_vm3, %v320_v62, %v316_v45 }
  0xd2   :  { %v365_v28 = vsel %vm222_vm4, %v364_v61, %v360_v16 }
  0xd3   :  { %v108_v52 = vpop.xlane.xlu1 %107 }
  0xd4   :  { %v84_v19 = vpop.xlane.xlu0 %83  ;;  %v125_v26 = vmul.f32 0.00390625, %v108_v52  ;;  %v235_v52 = vrot.slane %v116_v49, %v1057_v27 }
  0xd5   :  { %v117_v3 = vmul.f32 0.00390625, %v84_v19 }
  0xd6   :  { %v282_v36 = vrot.slane %v125_v26, %v1063_v53  ;;  %v237_v40 = vsel %vm236_vm6, %v235_v52, %v230_v59 }
  0xd7   :  { %v167_v13 = vpop.xlane.xlu1 %166  ;;  %v242_v22 = vrot.slane %v117_v3, %v1063_v53  ;;  %v394_v3 = vld [vmem:[%s1184_s2] sm:$0xf]  ;;  %s824_s2 = smov [#allocation5]  }
  0xd8   :  { %v143_v23 = vpop.xlane.xlu0 %142  ;;  %v369_v11 = vrot.slane %v167_v13, %v1052_v35  ;;  %v278_v13 = vsel %vm236_vm6, %v277_v5, %v273_v29  ;;  %743 = vmatpush3.msk.msra.mxu1 %vm474_vm12, %v394_v3  ;;  %v1219_v3 = vld [vmem:[#allocation17_spill] sm:$0xff]  ;;  %s697_s15 = sshll.u32 %s824_s2, 4  ;;  %s698_s15 = int_to_ptr.vmem [resolvable:$true] %s697_s15 }
  0xd9   :  { %v330_v19 = vrot.slane %v143_v23, %v1052_v35  ;;  %v326_v35 = vsel %vm222_vm4, %v325_v37, %v321_v42  ;;  %v283_v17 = vsel %vm243_vm7, %v282_v36, %v278_v13  ;;  %v560_v37 = vsub.s32 0, %v1024_v10  ;;  %s792_s16 = scalar_lea.vmem %s698_s15, 4096  ;;  %p797_p9 = scmp.lt.s32.totalorder %s698_s15, %s698_s15 }
  0xda   :  { %v370_v43 = vsel %vm229_vm5, %v369_v11, %v365_v28  ;;  %p793_p8 = scmp.ne.s32.totalorder %s698_s15, %s792_s16  ;;  %p798_p10 = scmp.lt.s32.totalorder %s792_s16, %s792_s16 }
  0xdb   :  { %v170_v32 = vpop.xlane.xlu1 %169  ;;  %v331_v49 = vsel %vm229_vm5, %v330_v19, %v326_v35 }
  0xdc   :  { %v146_v44 = vpop.xlane.xlu0 %145  ;;  %v374_v18 = vrot.slane %v170_v32, %v1057_v27  ;;  %p799_p11 = por %p798_p10, %p797_p9 }
  0xdd   :  { %v335_v41 = vrot.slane %v146_v44, %v1057_v27  ;;  %v244_v27 = vsel %vm243_vm7, %v242_v22, %v237_v40  ;;  %v595_v44 = vsub.s32 1, %v1024_v10 }
  0xde   :  { %v375_v56 = vsel %vm236_vm6, %v374_v18, %v370_v43  ;;  %v285_v48 = vsel %vm284_vm8, %v283_v17, %v244_v27  ;;  %p800_p12 = pnand %p799_p11, %p793_p8 }
  0xdf   :  { %v173_v50 = vpop.xlane.xlu1 %172  ;;  %v336_v24 = vsel %vm236_vm6, %v335_v41, %v331_v49  ;;  %v1214_v49 = vld [vmem:[#allocation9_spill] sm:$0xff] }
  0xe0   :  { %v379_v51 = vrot.slane %v173_v50, %v1063_v53  ;;  %v149_v34 = vpop.xlane.xlu0 %148 }
  0xe1   :  { %v340_v57 = vrot.slane %v149_v34, %v1063_v53  ;;  %v1212_v34 = vld [vmem:[#allocation10_spill] sm:$0xff] }
  0xe2   :  { %v380_v26 = vsel %vm243_vm7, %v379_v51, %v375_v56 }
  0xe3   :  { %v341_v23 = vsel %vm243_vm7, %v340_v57, %v336_v24  ;;  %v1215_v57 = vld [vmem:[#allocation13_spill] sm:$0xff] }
  0xe4   :  { %v382_v63 = vsel %vm381_vm9, %v380_v26, %v341_v23  ;;  %v1216_v26 = vld [vmem:[#allocation14_spill] sm:$0xff]  ;;  %v1217_v23 = vld [vmem:[#allocation11_spill] sm:$0xff] }
  0xe5   :  { %v385_v6 = vsel %vm384_vm10, %v285_v48, %v382_v63  ;;  %v1218_v63 = vld [vmem:[#allocation12_spill] sm:$0xff] }
  0xe6   :  { %740 = vmatmul.mubr.msk.f32.vlgmr.msra.gmra.mrb[0].mxu0 %vm395_vm11, %v385_v6 }
 0x1b9   :  { %v465_v53 = vpop.f32.mrb[0].mxu0 }
 0x1ba   :  { %v469_v25 = vmax.f32 %v465_v53, 0.0  ;;  %v741_v33 = vpop.f32.mrb[1].mxu0 }
 0x1bc   :  { %745 = vmatmul.mubr.msk.f32.vlgmr.msra.gmra.mrb[0].mxu1 %vm470_vm13, %v469_v25  ;;  %v1220_v25 = vld [vmem:[#allocation18_spill] sm:$0xff] }
 0x28f   :  { %v544_v7 = vpop.f32.mrb[0].mxu1 }
 0x290   :  { %v549_v60 = vrot.slane %v544_v7, 2  ;;  %v746_v62 = vpop.f32.mrb[1].mxu1 }
 0x292   :  { %v551_v5 = vadd.f32 %v549_v60, %v544_v7  ;;  %v1221_v60 = vld [vmem:[#allocation15_spill] sm:$0xff] }
 0x294   :  { %v552_v52 = vsub.f32 0.0, %v551_v5  ;;  %v1222_v5 = vld [vmem:[#allocation16_spill] sm:$0xff] }
 0x296   :  { %v553_v61 = vmul.f32 1.442695, %v552_v52 }
 0x298   :  { %766 = vpow2.f32 %v553_v61 }
 0x2a2   :  { %v767_v32 = vpop.eup %766 }
 0x2a3   :  { %v555_v58 = vadd.f32 1.0, %v767_v32  ;;  %v1223_v32 = vld [vmem:[#allocation19_spill] sm:$0xff] }
 0x2a5   :  { %768 = vrcp.f32 %v555_v58 }
 0x2af   :  { %v769_v36 = vpop.eup %768 }
 0x2b0   :  { %v561_v11 = vrot.slane %v769_v36, %v560_v37  ;;  %v596_v45 = vrot.slane %v769_v36, %v595_v44  ;;  %v1224_v37 = vld [vmem:[#allocation20_spill] sm:$0xff] }
 0x2b2   :  { %567 = vbcast.lane.b32.xlu1 %v561_v11, 264  ;;  %563 = vbcast.lane.b32.xlu0 %v561_v11, 256 }
 0x2b6   :  { %571 = vbcast.lane.b32.xlu1 %v561_v11, 272  ;;  %579 = vbcast.lane.b32.xlu0 %v561_v11, 288 }
 0x2ba   :  { %575 = vbcast.lane.b32.xlu1 %v561_v11, 280  ;;  %587 = vbcast.lane.b32.xlu0 %v561_v11, 304 }
 0x2be   :  { %583 = vbcast.lane.b32.xlu1 %v561_v11, 296  ;;  %598 = vbcast.lane.b32.xlu0 %v596_v45, 256 }
 0x2c2   :  { %591 = vbcast.lane.b32.xlu1 %v561_v11, 312  ;;  %606 = vbcast.lane.b32.xlu0 %v596_v45, 272 }
 0x2c6   :  { %602 = vbcast.lane.b32.xlu1 %v596_v45, 264  ;;  %614 = vbcast.lane.b32.xlu0 %v596_v45, 288 }
 0x2ca   :  { %610 = vbcast.lane.b32.xlu1 %v596_v45, 280  ;;  %622 = vbcast.lane.b32.xlu0 %v596_v45, 304 }
 0x2ce   :  { %618 = vbcast.lane.b32.xlu1 %v596_v45, 296 }
 0x2d2   :  { %626 = vbcast.lane.b32.xlu1 %v596_v45, 312 }
 0x324   :  { %v568_v22 = vpop.permute.xlu1 %567  ;;  %v564_v19 = vpop.permute.xlu0 %563 }
 0x325   :  { %v630_v18 = vmul.f32 %v568_v22, %v876_v8  ;;  %v631_v29 = vmul.f32 %v568_v22, %v878_v9  ;;  %v628_v10 = vmul.f32 %v564_v19, %v864_v2  ;;  %v629_v59 = vmul.f32 %v564_v19, %v868_v4 }
 0x327   :  { %662 = vst [vmem:[#allocation5 + $0x10] sm:$0xff] %v630_v18  ;;  %663 = vst [vmem:[#allocation5 + $0x18] sm:$0xff] %v631_v29 }
 0x328   :  { %660 = vst [vmem:[#allocation5] sm:$0xff] %v628_v10  ;;  %661 = vst [vmem:[#allocation5 + $0x8] sm:$0xff] %v629_v59  ;;  %v572_v16 = vpop.permute.xlu1 %571  ;;  %v580_v41 = vpop.permute.xlu0 %579 }
 0x329   :  { %v632_v42 = vmul.f32 %v572_v16, %v888_v14  ;;  %v633_v13 = vmul.f32 %v572_v16, %v890_v15  ;;  %v636_v40 = vmul.f32 %v580_v41, %v920_v30  ;;  %v637_v8 = vmul.f32 %v580_v41, %v922_v31 }
 0x32b   :  { %664 = vst [vmem:[#allocation5 + $0x20] sm:$0xff] %v632_v42  ;;  %665 = vst [vmem:[#allocation5 + $0x28] sm:$0xff] %v633_v13 }
 0x32c   :  { %668 = vst [vmem:[#allocation5 + $0x40] sm:$0xff] %v636_v40  ;;  %669 = vst [vmem:[#allocation5 + $0x48] sm:$0xff] %v637_v8  ;;  %v576_v2 = vpop.permute.xlu1 %575  ;;  %v588_v4 = vpop.permute.xlu0 %587 }
 0x32d   :  { %v634_v9 = vmul.f32 %v576_v2, %v900_v20  ;;  %v635_v28 = vmul.f32 %v576_v2, %v902_v21  ;;  %v640_v50 = vmul.f32 %v588_v4, %v952_v46  ;;  %v641_v14 = vmul.f32 %v588_v4, %v954_v47 }
 0x32f   :  { %666 = vst [vmem:[#allocation5 + $0x30] sm:$0xff] %v634_v9  ;;  %667 = vst [vmem:[#allocation5 + $0x38] sm:$0xff] %v635_v28 }
 0x330   :  { %672 = vst [vmem:[#allocation5 + $0x60] sm:$0xff] %v640_v50  ;;  %673 = vst [vmem:[#allocation5 + $0x68] sm:$0xff] %v641_v14  ;;  %v584_v15 = vpop.permute.xlu1 %583  ;;  %v599_v30 = vpop.permute.xlu0 %598 }
 0x331   :  { %v638_v31 = vmul.f32 %v584_v15, %v936_v38  ;;  %v639_v35 = vmul.f32 %v584_v15, %v938_v39  ;;  %v644_v17 = vmul.f32 %v599_v30, %v860_v0  ;;  %v645_v20 = vmul.f32 %v599_v30, %v862_v1  ;;  %v1213_v39 = vld [vmem:[#allocation8_spill] sm:$0xff] }
 0x333   :  { %670 = vst [vmem:[#allocation5 + $0x50] sm:$0xff] %v638_v31  ;;  %671 = vst [vmem:[#allocation5 + $0x58] sm:$0xff] %v639_v35 }
 0x334   :  { %676 = vst [vmem:[#allocation5 + $0x80] sm:$0xff] %v644_v17  ;;  %677 = vst [vmem:[#allocation5 + $0x88] sm:$0xff] %v645_v20  ;;  %v592_v21 = vpop.permute.xlu1 %591  ;;  %v607_v46 = vpop.permute.xlu0 %606 }
 0x335   :  { %v642_v47 = vmul.f32 %v592_v21, %v968_v54  ;;  %v643_v43 = vmul.f32 %v592_v21, %v970_v55  ;;  %v648_v51 = vmul.f32 %v607_v46, %v884_v12  ;;  %v649_v38 = vmul.f32 %v607_v46, %v1212_v34 }
 0x337   :  { %674 = vst [vmem:[#allocation5 + $0x70] sm:$0xff] %v642_v47  ;;  %675 = vst [vmem:[#allocation5 + $0x78] sm:$0xff] %v643_v43 }
 0x338   :  { %680 = vst [vmem:[#allocation5 + $0xa0] sm:$0xff] %v648_v51  ;;  %681 = vst [vmem:[#allocation5 + $0xa8] sm:$0xff] %v649_v38  ;;  %v603_v0 = vpop.permute.xlu1 %602  ;;  %v615_v1 = vpop.permute.xlu0 %614 }
 0x339   :  { %v646_v27 = vmul.f32 %v603_v0, %v1213_v39  ;;  %v647_v56 = vmul.f32 %v603_v0, %v1214_v49  ;;  %v652_v24 = vmul.f32 %v615_v1, %v1215_v57  ;;  %v653_v54 = vmul.f32 %v615_v1, %v1216_v26 }
 0x33b   :  { %678 = vst [vmem:[#allocation5 + $0x90] sm:$0xff] %v646_v27  ;;  %679 = vst [vmem:[#allocation5 + $0x98] sm:$0xff] %v647_v56 }
 0x33c   :  { %684 = vst [vmem:[#allocation5 + $0xc0] sm:$0xff] %v652_v24  ;;  %685 = vst [vmem:[#allocation5 + $0xc8] sm:$0xff] %v653_v54  ;;  %v611_v12 = vpop.permute.xlu1 %610  ;;  %v623_v55 = vpop.permute.xlu0 %622 }
 0x33d   :  { %v650_v48 = vmul.f32 %v611_v12, %v1217_v23  ;;  %v651_v6 = vmul.f32 %v611_v12, %v1218_v63  ;;  %v656_v53 = vmul.f32 %v623_v55, %v1219_v3  ;;  %v657_v33 = vmul.f32 %v623_v55, %v1220_v25 }
 0x33f   :  { %682 = vst [vmem:[#allocation5 + $0xb0] sm:$0xff] %v650_v48  ;;  %683 = vst [vmem:[#allocation5 + $0xb8] sm:$0xff] %v651_v6 }
 0x340   :  { %688 = vst [vmem:[#allocation5 + $0xe0] sm:$0xff] %v656_v53  ;;  %689 = vst [vmem:[#allocation5 + $0xe8] sm:$0xff] %v657_v33  ;;  %v619_v7 = vpop.permute.xlu1 %618 }
 0x341   :  { %v654_v62 = vmul.f32 %v619_v7, %v1221_v60  ;;  %v655_v52 = vmul.f32 %v619_v7, %v1222_v5 }
 0x343   :  { %686 = vst [vmem:[#allocation5 + $0xd0] sm:$0xff] %v654_v62  ;;  %687 = vst [vmem:[#allocation5 + $0xd8] sm:$0xff] %v655_v52 }
 0x344   :  { %v627_v61 = vpop.permute.xlu1 %626 }
 0x345   :  { %v658_v58 = vmul.f32 %v627_v61, %v1223_v32  ;;  %v659_v36 = vmul.f32 %v627_v61, %v1224_v37 }
 0x347   :  { %690 = vst [vmem:[#allocation5 + $0xf0] sm:$0xff] %v658_v58  ;;  %691 = vst [vmem:[#allocation5 + $0xf8] sm:$0xff] %v659_v36 }
 0x348   :  { %803 = shalt.err (!%p800_p12)
}
 0x349   :  { %s804_s19 = scalar_lea.hbm %s1185_s3, 4096 }
 0x34a   :  { %p805_p13 = scmp.ne.s32.totalorder %s1185_s3, %s804_s19  ;;  %p808_p0 = scmp.lt.u32.totalorder %s804_s19, %s1185_s3 }
 0x34c   :  { %p810_p1 = pnand %p808_p0, %p805_p13 }
 0x34e   :  { %813 = shalt.err (!%p810_p1)
}
 0x34f   :  { %703 = dma.vmem_to_hbm [thread:$0]  %s698_s15, 4096, %s1185_s3, [#allocation4], %s819_s22, %s819_s22, %s820_s23  }
 0x350   :  { %816 = dma.done.wait [#allocation4], 4096  }
 0x351   :  { %817 = vsyncadd [#allocation4], 4294963200 }
 0x352   :  { %707 = vsyncpa [#allocation3], 1 }
 0x353   :  { %708 = vsyncpa [#allocation4], 1 }

</bundles_post_ra>
